<compile_context>
chip_gen: v7x
topology: tpu7x:2x2x1
jax: 0.10.0
libtpu: 0.0.40
codegen_flags: <defaults>
</compile_context>

<pallas_src>
import jax
import jax.numpy as jnp
from jax.experimental import pallas as pl
from jax.experimental.pallas import tpu as pltpu


def attention_gate_kernel(g_ref, x_ref, wg_ref, wx_ref, b1_ref,
                          wpsi_ref, bpsi_ref, out_ref):
    # g_ref:   (Nb, F_g, tp)   pixel-last tile(s) of the gating signal
    # x_ref:   (Nb, F_l, tp)   pixel-last tile(s) of the skip connection
    # wg_ref:  (F_int, F_g) = Wg^T,  wx_ref: (F_int, F_l) = Wx^T
    # b1_ref:  (F_int, 1) = bg + bx (folded in the wrapper)
    # wpsi_ref:(F_int, 1),  bpsi_ref: (1, 1)
    # out_ref: (Nb, F_l, tp)
    nb = g_ref.shape[0]
    wg = wg_ref[...]
    wx = wx_ref[...]
    b1 = b1_ref[...]
    wpsi = wpsi_ref[...]
    bpsi = bpsi_ref[...]
    # Static unroll over the (small) per-step batch block; each iteration is an
    # independent lane-dense 2-D problem, so no in-kernel transposes are needed.
    for b in range(nb):
        g_t = g_ref[b]                                            # (F_g, tp)
        x_t = x_ref[b]                                            # (F_l, tp)
        g1x1 = (jnp.dot(wg, g_t, preferred_element_type=jnp.float32)
                + jnp.dot(wx, x_t, preferred_element_type=jnp.float32)
                + b1)                                             # (F_int, tp) f32
        psi_in = jnp.maximum(g1x1, 0.0)                           # ReLU
        # psi 1x1-conv (F_int -> 1): VPU broadcast-mul + sublane reduce (avoids
        # an N=1 MXU matmul whose result would be 1 lane wide).
        alpha = jax.nn.sigmoid(
            jnp.sum(psi_in * wpsi, axis=0, keepdims=True) + bpsi)  # (1, tp) f32
        if out_ref.dtype == jnp.float32:
            out_ref[b] = x_t * alpha
        else:
            # bf16/half inputs: gate in the narrow dtype (halves vreg pressure
            # and VALU work on v6e/v7x; v5e's lowering upcasts automatically).
            out_ref[b] = x_t * alpha.astype(out_ref.dtype)


def _round_up(x, m):
    return ((x + m - 1) // m) * m


def _vmem_capacity_bytes():
    """Physical VMEM of the current generation (128 MiB v5e/v6e, 64 MiB v7x)."""
    try:
        return int(pltpu.get_tpu_info().vmem_capacity_bytes)
    except Exception:
        return 64 << 20   # conservative (v7x-sized) fallback


def _pick_pixel_tile(hw, tp_cap):
    """Return (tp, hw_pad): tp is a multiple of 128 and divides hw_pad >= hw.

    Prefers an exact divisor of hw (no padding); otherwise pads hw up instead
    of ever returning tp = hw (which could blow VMEM or give non-128 lanes).
    """
    tp_cap = max(128, (tp_cap // 128) * 128)
    hw_128 = _round_up(hw, 128)
    if hw_128 <= tp_cap:
        return hw_128, hw_128
    t = tp_cap
    while t >= max(128, tp_cap // 2):   # don't shrink below ~half cap just to avoid a pad
        if hw % t == 0:
            return t, hw
        t -= 128
    return tp_cap, _round_up(hw, tp_cap)


def attention_gate_pallas(g_nchw, x_nchw, params, *, tp_target=4096):
    """g_nchw: (N, F_g, H, W); x_nchw: (N, F_l, H, W). Returns (N, F_l, H, W)."""
    wg, bg, wx, bx, wpsi, bpsi = params
    N, F_g, H, W = g_nchw.shape
    _, F_l, _, _ = x_nchw.shape
    F_int = wg.shape[1]
    HW = H * W
    itemsize = jnp.dtype(x_nchw.dtype).itemsize

    # ---- generation-aware VMEM budget -------------------------------------
    vmem_cap = _vmem_capacity_bytes()
    vmem_budget = int(0.70 * vmem_cap)

    # Single-buffered weights/biases, padded to vreg tiles.
    weight_bytes = 4 * (_round_up(F_int, 8)
                        * (_round_up(F_g, 128) + _round_up(F_l, 128) + 2 * 128)
                        + 8 * 128)
    # Per pixel of tile: double-buffered g/x/out I/O + f32 (F_int, tp) temporaries.
    per_pixel_bytes = 2 * (F_g + 2 * F_l) * itemsize + 3 * F_int * 4
    max_tp_by_vmem = max(128, (vmem_budget - weight_bytes) // per_pixel_bytes)

    tp, hw_pad = _pick_pixel_tile(HW, min(tp_target, max_tp_by_vmem))
    n_ptiles = hw_pad // tp

    # ---- block several batch images per step on deep / small-HW stages -----
    per_image_step_bytes = tp * (F_g + 2 * F_l) * itemsize
    io_headroom = vmem_budget - weight_bytes - 3 * F_int * tp * 4
    nb = 1
    for cand in range(1, N + 1):
        if N % cand:
            continue
        if 2 * cand * per_image_step_bytes > io_headroom:
            break
        if cand > 1 and (N // cand) * n_ptiles < 2 and N * n_ptiles >= 2:
            continue                      # keep >=2 parallel steps for v7x's 2 TCs
        nb = cand
        if cand * per_image_step_bytes >= (2 << 20):
            break                         # ~2 MiB of HBM traffic per step is enough

    # ---- data prep (pure reshapes; NCHW is already channel-major) ----------
    g3 = g_nchw.reshape(N, F_g, HW)
    x3 = x_nchw.reshape(N, F_l, HW)
    if hw_pad != HW:
        # Cheap pad so every tile is full-width and lane-dense (no masked vst).
        g3 = jnp.pad(g3, ((0, 0), (0, 0), (0, hw_pad - HW)))
        x3 = jnp.pad(x3, ((0, 0), (0, 0), (0, hw_pad - HW)))

    # Weight prep (tiny, one-time): transposed weights for pixel-last matmuls,
    # fused input-projection bias, and column-shaped psi weight.
    wgT = jnp.transpose(wg)                       # (F_int, F_g)
    wxT = jnp.transpose(wx)                       # (F_int, F_l)
    b1 = (bg + bx).reshape(F_int, 1)
    wpsi_col = wpsi.reshape(F_int, 1)
    bpsi2 = bpsi.reshape(1, 1)

    grid = (N // nb, n_ptiles)

    need_bytes = 2 * nb * per_image_step_bytes + 3 * F_int * tp * 4 + weight_bytes
    vmem_limit = int(min(int(0.85 * vmem_cap), max(2 * need_bytes, 32 << 20)))

    cost = pl.CostEstimate(
        flops=int(2 * N * HW * (F_int * (F_g + F_l) + F_int + F_l)),
        transcendentals=int(N * HW),
        bytes_accessed=int(N * HW * (F_g + 2 * F_l) * itemsize
                           + (F_int * (F_g + F_l) + 2 * F_int + 1) * 4))

    def _build_and_call(single_buffer_weights):
        w_kwargs = dict(pipeline_mode=pl.Buffered(1)) if single_buffer_weights else {}
        wspec = lambda shape: pl.BlockSpec(shape, lambda n, p: (0, 0), **w_kwargs)
        return pl.pallas_call(
            attention_gate_kernel,
            out_shape=jax.ShapeDtypeStruct((N, F_l, hw_pad), x3.dtype),
            grid_spec=pltpu.PrefetchScalarGridSpec(
                num_scalar_prefetch=0,
                grid=grid,
                in_specs=[
                    pl.BlockSpec((nb, F_g, tp), lambda n, p: (n, 0, p)),   # g tiles
                    pl.BlockSpec((nb, F_l, tp), lambda n, p: (n, 0, p)),   # x tiles
                    wspec((F_int, F_g)),                                   # Wg^T
                    wspec((F_int, F_l)),                                   # Wx^T
                    wspec((F_int, 1)),                                     # bg + bx
                    wspec((F_int, 1)),                                     # Wpsi
                    wspec((1, 1)),                                         # bpsi
                ],
                out_specs=pl.BlockSpec((nb, F_l, tp), lambda n, p: (n, 0, p)),
            ),
            compiler_params=pltpu.CompilerParams(
                dimension_semantics=("parallel", "parallel"),
                vmem_limit_bytes=vmem_limit),
            cost_estimate=cost,
        )(g3, x3, wgT, wxT, b1, wpsi_col, bpsi2)

    try:
        out3 = _build_and_call(True)
    except Exception:
        # Compatibility fallback: if pipeline_mode / Buffered(1) is not
        # supported, only cost is one extra (double-buffered) weight copy.
        out3 = _build_and_call(False)

    if hw_pad != HW:
        out3 = out3[:, :, :HW]
    return out3.reshape(N, F_l, H, W)


def attention_gate_ref(g_nchw, x_nchw, params):
    """Plain-JAX reference mirroring the PyTorch forward (NCHW semantics)."""
    wg, bg, wx, bx, wpsi, bpsi = params
    g = jnp.transpose(g_nchw, (0, 2, 3, 1))
    x = jnp.transpose(x_nchw, (0, 2, 3, 1))
    g1 = g @ wg + bg
    x1 = x @ wx + bx
    psi_in = jnp.maximum(g1 + x1, 0.0)
    alpha = jax.nn.sigmoid(psi_in @ wpsi + bpsi)
    out = x * alpha
    return jnp.transpose(out, (0, 3, 1, 2))


def init_params(key, F_g, F_l, F_int, dtype=jnp.float32):
    ks = jax.random.split(key, 6)
    # nn.Conv2d(Cin, Cout, 1) weight is (Cout, Cin, 1, 1); we store its
    # transpose (Cin, Cout) so a right-matmul reproduces the 1x1 conv.
    wg = jax.random.normal(ks[0], (F_g, F_int), dtype) * 0.1
    bg = jax.random.normal(ks[1], (F_int,), dtype) * 0.1
    wx = jax.random.normal(ks[2], (F_l, F_int), dtype) * 0.1
    bx = jax.random.normal(ks[3], (F_int,), dtype) * 0.1
    wpsi = jax.random.normal(ks[4], (F_int, 1), dtype) * 0.1
    bpsi = jax.random.normal(ks[5], (1,), dtype) * 0.1
    return (wg, bg, wx, bx, wpsi, bpsi)


if __name__ == "__main__":
    key = jax.random.PRNGKey(0)
    k_g, k_x, k_p = jax.random.split(key, 3)

    N, F_g, F_l, F_int, H, W = 2, 4, 4, 8, 16, 16
    g = jax.random.normal(k_g, (N, F_g, H, W), jnp.float32)
    x_skip = jax.random.normal(k_x, (N, F_l, H, W), jnp.float32)
    params = init_params(k_p, F_g, F_l, F_int)

    out = attention_gate_pallas(g, x_skip, params)
    out = jax.block_until_ready(out)

    ref = attention_gate_ref(g, x_skip, params)
    assert out.shape == (N, F_l, H, W)
    assert jnp.allclose(out, ref, atol=1e-5, rtol=1e-5), "mismatch vs reference"

    print("KERNEL_OK")
</pallas_src>

<mosaic_0001>
module attributes {stable_mosaic.version = 11 : i64} {
  func.func @attention_gate_kernel(%arg0: i32, %arg1: i32, %arg2: memref<1x4x256xf32, #tpu.memory_space<vmem>>, %arg3: memref<1x4x256xf32, #tpu.memory_space<vmem>>, %arg4: memref<8x4xf32, #tpu.memory_space<vmem>>, %arg5: memref<8x4xf32, #tpu.memory_space<vmem>>, %arg6: memref<8x1xf32, #tpu.memory_space<vmem>>, %arg7: memref<8x1xf32, #tpu.memory_space<vmem>>, %arg8: memref<1x1xf32, #tpu.memory_space<vmem>>, %arg9: memref<1x4x256xf32, #tpu.memory_space<vmem>>) attributes {dimension_semantics = [#tpu.dimension_semantics<parallel>, #tpu.dimension_semantics<parallel>], iteration_bounds = array<i64: 2, 1>, scalar_prefetch = 0 : i64, scratch_operands = 0 : i64, tpu.core_type = #tpu.core_type<tc>, window_params = [{transform_indices = @transform_0, window_bounds = array<i64: 1, 4, 256>}, {transform_indices = @transform_1, window_bounds = array<i64: 1, 4, 256>}, {pipeline_mode = #tpu.pipeline_mode<synchronous>, transform_indices = @transform_2, window_bounds = array<i64: 8, 4>}, {pipeline_mode = #tpu.pipeline_mode<synchronous>, transform_indices = @transform_3, window_bounds = array<i64: 8, 4>}, {pipeline_mode = #tpu.pipeline_mode<synchronous>, transform_indices = @transform_4, window_bounds = array<i64: 8, 1>}, {pipeline_mode = #tpu.pipeline_mode<synchronous>, transform_indices = @transform_5, window_bounds = array<i64: 8, 1>}, {pipeline_mode = #tpu.pipeline_mode<synchronous>, transform_indices = @transform_6, window_bounds = array<i64: 1, 1>}, {transform_indices = @transform_7, window_bounds = array<i64: 1, 4, 256>}]} {
    %c0 = arith.constant 0 : index
    %c0_0 = arith.constant 0 : index
    %0 = vector.load %arg4[%c0, %c0_0] : memref<8x4xf32, #tpu.memory_space<vmem>>, vector<8x4xf32>
    %c0_1 = arith.constant 0 : index
    %c0_2 = arith.constant 0 : index
    %1 = vector.load %arg5[%c0_1, %c0_2] : memref<8x4xf32, #tpu.memory_space<vmem>>, vector<8x4xf32>
    %c0_3 = arith.constant 0 : index
    %c0_4 = arith.constant 0 : index
    %2 = vector.load %arg6[%c0_3, %c0_4] : memref<8x1xf32, #tpu.memory_space<vmem>>, vector<8x1xf32>
    %c0_5 = arith.constant 0 : index
    %c0_6 = arith.constant 0 : index
    %3 = vector.load %arg7[%c0_5, %c0_6] : memref<8x1xf32, #tpu.memory_space<vmem>>, vector<8x1xf32>
    %c0_7 = arith.constant 0 : index
    %c0_8 = arith.constant 0 : index
    %4 = vector.load %arg8[%c0_7, %c0_8] : memref<1x1xf32, #tpu.memory_space<vmem>>, vector<1x1xf32>
    %c0_9 = arith.constant 0 : index
    %c0_10 = arith.constant 0 : index
    %c0_11 = arith.constant 0 : index
    %5 = vector.load %arg2[%c0_9, %c0_10, %c0_11] : memref<1x4x256xf32, #tpu.memory_space<vmem>>, vector<1x4x256xf32>
    %6 = vector.shape_cast %5 : vector<1x4x256xf32> to vector<4x256xf32>
    %c0_12 = arith.constant 0 : index
    %c0_13 = arith.constant 0 : index
    %c0_14 = arith.constant 0 : index
    %7 = vector.load %arg3[%c0_12, %c0_13, %c0_14] : memref<1x4x256xf32, #tpu.memory_space<vmem>>, vector<1x4x256xf32>
    %8 = vector.shape_cast %7 : vector<1x4x256xf32> to vector<4x256xf32>
    %cst = arith.constant dense<0.000000e+00> : vector<8x256xf32>
    %9 = tpu.matmul %0, %6, %cst {dimension_numbers = #tpu.dot_dimension_numbers<[1], [0], [0], [1], [0, 0, 1, 1], [], []>} : vector<8x4xf32>, vector<4x256xf32>, vector<8x256xf32> -> vector<8x256xf32>
    %cst_15 = arith.constant dense<0.000000e+00> : vector<8x256xf32>
    %10 = tpu.matmul %1, %8, %cst_15 {dimension_numbers = #tpu.dot_dimension_numbers<[1], [0], [0], [1], [0, 0, 1, 1], [], []>} : vector<8x4xf32>, vector<4x256xf32>, vector<8x256xf32> -> vector<8x256xf32>
    %11 = arith.addf %9, %10 : vector<8x256xf32>
    %12 = vector.broadcast %2 : vector<8x1xf32> to vector<8x256xf32>
    %13 = arith.addf %11, %12 : vector<8x256xf32>
    %cst_16 = arith.constant 0.000000e+00 : f32
    %14 = vector.broadcast %cst_16 : f32 to vector<8x256xf32>
    %15 = arith.maximumf %13, %14 : vector<8x256xf32>
    %16 = vector.broadcast %3 : vector<8x1xf32> to vector<8x256xf32>
    %17 = arith.mulf %15, %16 : vector<8x256xf32>
    %cst_17 = arith.constant dense<0.000000e+00> : vector<256xf32>
    %18 = vector.multi_reduction <add>, %17, %cst_17 [0] : vector<8x256xf32> to vector<256xf32>
    %19 = vector.shape_cast %18 : vector<256xf32> to vector<1x256xf32>
    %20 = vector.broadcast %4 : vector<1x1xf32> to vector<1x256xf32>
    %21 = arith.addf %19, %20 : vector<1x256xf32>
    %22 = arith.negf %21 : vector<1x256xf32>
    %23 = math.exp %22 : vector<1x256xf32>
    %cst_18 = arith.constant 1.000000e+00 : f32
    %24 = vector.broadcast %cst_18 : f32 to vector<1x256xf32>
    %25 = arith.addf %24, %23 : vector<1x256xf32>
    %26 = arith.divf %24, %25 : vector<1x256xf32>
    %27 = vector.broadcast %26 : vector<1x256xf32> to vector<4x256xf32>
    %28 = arith.mulf %8, %27 : vector<4x256xf32>
    %c0_19 = arith.constant 0 : index
    %c0_20 = arith.constant 0 : index
    %c0_21 = arith.constant 0 : index
    %29 = vector.load %arg9[%c0_19, %c0_20, %c0_21] : memref<1x4x256xf32, #tpu.memory_space<vmem>>, vector<1x4x256xf32>
    %30 = vector.shape_cast %29 : vector<1x4x256xf32> to vector<4x256xf32>
    %31 = vector.shape_cast %28 : vector<4x256xf32> to vector<1x4x256xf32>
    tpu.vector_store %arg9[%c0_19, %c0_20, %c0_21], %31 {strides = array<i32>} : memref<1x4x256xf32, #tpu.memory_space<vmem>>, vector<1x4x256xf32>,
    return
  }
  func.func @transform_0(%arg0: i32, %arg1: i32) -> (i32, i32, i32) {
    %c0_i32 = arith.constant 0 : i32
    %c0_i32_0 = arith.constant 0 : i32
    return %arg0, %c0_i32, %arg1 : i32, i32, i32
  }
  func.func @transform_1(%arg0: i32, %arg1: i32) -> (i32, i32, i32) {
    %c0_i32 = arith.constant 0 : i32
    %c0_i32_0 = arith.constant 0 : i32
    return %arg0, %c0_i32, %arg1 : i32, i32, i32
  }
  func.func @transform_2(%arg0: i32, %arg1: i32) -> (i32, i32) {
    %c0_i32 = arith.constant 0 : i32
    %c0_i32_0 = arith.constant 0 : i32
    %c0_i32_1 = arith.constant 0 : i32
    return %c0_i32, %c0_i32_0 : i32, i32
  }
  func.func @transform_3(%arg0: i32, %arg1: i32) -> (i32, i32) {
    %c0_i32 = arith.constant 0 : i32
    %c0_i32_0 = arith.constant 0 : i32
    %c0_i32_1 = arith.constant 0 : i32
    return %c0_i32, %c0_i32_0 : i32, i32
  }
  func.func @transform_4(%arg0: i32, %arg1: i32) -> (i32, i32) {
    %c0_i32 = arith.constant 0 : i32
    %c0_i32_0 = arith.constant 0 : i32
    %c0_i32_1 = arith.constant 0 : i32
    return %c0_i32, %c0_i32_0 : i32, i32
  }
  func.func @transform_5(%arg0: i32, %arg1: i32) -> (i32, i32) {
    %c0_i32 = arith.constant 0 : i32
    %c0_i32_0 = arith.constant 0 : i32
    %c0_i32_1 = arith.constant 0 : i32
    return %c0_i32, %c0_i32_0 : i32, i32
  }
  func.func @transform_6(%arg0: i32, %arg1: i32) -> (i32, i32) {
    %c0_i32 = arith.constant 0 : i32
    %c0_i32_0 = arith.constant 0 : i32
    %c0_i32_1 = arith.constant 0 : i32
    return %c0_i32, %c0_i32_0 : i32, i32
  }
  func.func @transform_7(%arg0: i32, %arg1: i32) -> (i32, i32, i32) {
    %c0_i32 = arith.constant 0 : i32
    %c0_i32_0 = arith.constant 0 : i32
    return %arg0, %c0_i32, %arg1 : i32, i32, i32
  }
}

module attributes {stable_mosaic.version = 11 : i64} {
  func.func @attention_gate_kernel(%arg0: i32, %arg1: i32, %arg2: memref<1x4x256xf32, #tpu.memory_space<vmem>>, %arg3: memref<1x4x256xf32, #tpu.memory_space<vmem>>, %arg4: memref<8x4xf32, #tpu.memory_space<vmem>>, %arg5: memref<8x4xf32, #tpu.memory_space<vmem>>, %arg6: memref<8x1xf32, #tpu.memory_space<vmem>>, %arg7: memref<8x1xf32, #tpu.memory_space<vmem>>, %arg8: memref<1x1xf32, #tpu.memory_space<vmem>>, %arg9: memref<1x4x256xf32, #tpu.memory_space<vmem>>) attributes {dimension_semantics = [#tpu.dimension_semantics<parallel>, #tpu.dimension_semantics<parallel>], iteration_bounds = array<i64: 2, 1>, scalar_prefetch = 0 : i64, scratch_operands = 0 : i64, tpu.core_type = #tpu.core_type<tc>, window_params = [{transform_indices = @transform_0, window_bounds = array<i64: 1, 4, 256>}, {transform_indices = @transform_1, window_bounds = array<i64: 1, 4, 256>}, {pipeline_mode = #tpu.pipeline_mode<synchronous>, transform_indices = @transform_2, window_bounds = array<i64: 8, 4>}, {pipeline_mode = #tpu.pipeline_mode<synchronous>, transform_indices = @transform_3, window_bounds = array<i64: 8, 4>}, {pipeline_mode = #tpu.pipeline_mode<synchronous>, transform_indices = @transform_4, window_bounds = array<i64: 8, 1>}, {pipeline_mode = #tpu.pipeline_mode<synchronous>, transform_indices = @transform_5, window_bounds = array<i64: 8, 1>}, {pipeline_mode = #tpu.pipeline_mode<synchronous>, transform_indices = @transform_6, window_bounds = array<i64: 1, 1>}, {transform_indices = @transform_7, window_bounds = array<i64: 1, 4, 256>}]} {
    %c0 = arith.constant 0 : index
    %c0_0 = arith.constant 0 : index
    %0 = vector.load %arg4[%c0, %c0_0] : memref<8x4xf32, #tpu.memory_space<vmem>>, vector<8x4xf32>
    %c0_1 = arith.constant 0 : index
    %c0_2 = arith.constant 0 : index
    %1 = vector.load %arg5[%c0_1, %c0_2] : memref<8x4xf32, #tpu.memory_space<vmem>>, vector<8x4xf32>
    %c0_3 = arith.constant 0 : index
    %c0_4 = arith.constant 0 : index
    %2 = vector.load %arg6[%c0_3, %c0_4] : memref<8x1xf32, #tpu.memory_space<vmem>>, vector<8x1xf32>
    %c0_5 = arith.constant 0 : index
    %c0_6 = arith.constant 0 : index
    %3 = vector.load %arg7[%c0_5, %c0_6] : memref<8x1xf32, #tpu.memory_space<vmem>>, vector<8x1xf32>
    %c0_7 = arith.constant 0 : index
    %c0_8 = arith.constant 0 : index
    %4 = vector.load %arg8[%c0_7, %c0_8] : memref<1x1xf32, #tpu.memory_space<vmem>>, vector<1x1xf32>
    %c0_9 = arith.constant 0 : index
    %c0_10 = arith.constant 0 : index
    %c0_11 = arith.constant 0 : index
    %5 = vector.load %arg2[%c0_9, %c0_10, %c0_11] : memref<1x4x256xf32, #tpu.memory_space<vmem>>, vector<1x4x256xf32>
    %6 = vector.shape_cast %5 : vector<1x4x256xf32> to vector<4x256xf32>
    %c0_12 = arith.constant 0 : index
    %c0_13 = arith.constant 0 : index
    %c0_14 = arith.constant 0 : index
    %7 = vector.load %arg3[%c0_12, %c0_13, %c0_14] : memref<1x4x256xf32, #tpu.memory_space<vmem>>, vector<1x4x256xf32>
    %8 = vector.shape_cast %7 : vector<1x4x256xf32> to vector<4x256xf32>
    %cst = arith.constant dense<0.000000e+00> : vector<8x256xf32>
    %9 = tpu.matmul %0, %6, %cst {dimension_numbers = #tpu.dot_dimension_numbers<[1], [0], [0], [1], [0, 0, 1, 1], [], []>} : vector<8x4xf32>, vector<4x256xf32>, vector<8x256xf32> -> vector<8x256xf32>
    %cst_15 = arith.constant dense<0.000000e+00> : vector<8x256xf32>
    %10 = tpu.matmul %1, %8, %cst_15 {dimension_numbers = #tpu.dot_dimension_numbers<[1], [0], [0], [1], [0, 0, 1, 1], [], []>} : vector<8x4xf32>, vector<4x256xf32>, vector<8x256xf32> -> vector<8x256xf32>
    %11 = arith.addf %9, %10 : vector<8x256xf32>
    %12 = vector.broadcast %2 : vector<8x1xf32> to vector<8x256xf32>
    %13 = arith.addf %11, %12 : vector<8x256xf32>
    %cst_16 = arith.constant 0.000000e+00 : f32
    %14 = vector.broadcast %cst_16 : f32 to vector<8x256xf32>
    %15 = arith.maximumf %13, %14 : vector<8x256xf32>
    %16 = vector.broadcast %3 : vector<8x1xf32> to vector<8x256xf32>
    %17 = arith.mulf %15, %16 : vector<8x256xf32>
    %cst_17 = arith.constant dense<0.000000e+00> : vector<256xf32>
    %18 = vector.multi_reduction <add>, %17, %cst_17 [0] : vector<8x256xf32> to vector<256xf32>
    %19 = vector.shape_cast %18 : vector<256xf32> to vector<1x256xf32>
    %20 = vector.broadcast %4 : vector<1x1xf32> to vector<1x256xf32>
    %21 = arith.addf %19, %20 : vector<1x256xf32>
    %22 = arith.negf %21 : vector<1x256xf32>
    %23 = math.exp %22 : vector<1x256xf32>
    %cst_18 = arith.constant 1.000000e+00 : f32
    %24 = vector.broadcast %cst_18 : f32 to vector<1x256xf32>
    %25 = arith.addf %24, %23 : vector<1x256xf32>
    %26 = arith.divf %24, %25 : vector<1x256xf32>
    %27 = vector.broadcast %26 : vector<1x256xf32> to vector<4x256xf32>
    %28 = arith.mulf %8, %27 : vector<4x256xf32>
    %c0_19 = arith.constant 0 : index
    %c0_20 = arith.constant 0 : index
    %c0_21 = arith.constant 0 : index
    %29 = vector.load %arg9[%c0_19, %c0_20, %c0_21] : memref<1x4x256xf32, #tpu.memory_space<vmem>>, vector<1x4x256xf32>
    %30 = vector.shape_cast %29 : vector<1x4x256xf32> to vector<4x256xf32>
    %31 = vector.shape_cast %28 : vector<4x256xf32> to vector<1x4x256xf32>
    tpu.vector_store %arg9[%c0_19, %c0_20, %c0_21], %31 {strides = array<i32>} : memref<1x4x256xf32, #tpu.memory_space<vmem>>, vector<1x4x256xf32>,
    return
  }
  func.func @transform_0(%arg0: i32, %arg1: i32) -> (i32, i32, i32) {
    %c0_i32 = arith.constant 0 : i32
    %c0_i32_0 = arith.constant 0 : i32
    return %arg0, %c0_i32, %arg1 : i32, i32, i32
  }
  func.func @transform_1(%arg0: i32, %arg1: i32) -> (i32, i32, i32) {
    %c0_i32 = arith.constant 0 : i32
    %c0_i32_0 = arith.constant 0 : i32
    return %arg0, %c0_i32, %arg1 : i32, i32, i32
  }
  func.func @transform_2(%arg0: i32, %arg1: i32) -> (i32, i32) {
    %c0_i32 = arith.constant 0 : i32
    %c0_i32_0 = arith.constant 0 : i32
    %c0_i32_1 = arith.constant 0 : i32
    return %c0_i32, %c0_i32_0 : i32, i32
  }
  func.func @transform_3(%arg0: i32, %arg1: i32) -> (i32, i32) {
    %c0_i32 = arith.constant 0 : i32
    %c0_i32_0 = arith.constant 0 : i32
    %c0_i32_1 = arith.constant 0 : i32
    return %c0_i32, %c0_i32_0 : i32, i32
  }
  func.func @transform_4(%arg0: i32, %arg1: i32) -> (i32, i32) {
    %c0_i32 = arith.constant 0 : i32
    %c0_i32_0 = arith.constant 0 : i32
    %c0_i32_1 = arith.constant 0 : i32
    return %c0_i32, %c0_i32_0 : i32, i32
  }
  func.func @transform_5(%arg0: i32, %arg1: i32) -> (i32, i32) {
    %c0_i32 = arith.constant 0 : i32
    %c0_i32_0 = arith.constant 0 : i32
    %c0_i32_1 = arith.constant 0 : i32
    return %c0_i32, %c0_i32_0 : i32, i32
  }
  func.func @transform_6(%arg0: i32, %arg1: i32) -> (i32, i32) {
    %c0_i32 = arith.constant 0 : i32
    %c0_i32_0 = arith.constant 0 : i32
    %c0_i32_1 = arith.constant 0 : i32
    return %c0_i32, %c0_i32_0 : i32, i32
  }
  func.func @transform_7(%arg0: i32, %arg1: i32) -> (i32, i32, i32) {
    %c0_i32 = arith.constant 0 : i32
    %c0_i32_0 = arith.constant 0 : i32
    return %arg0, %c0_i32, %arg1 : i32, i32, i32
  }
}

</mosaic_0001>

<bundles_post_ra>
// kernel: tpu_custom_call.1
= control target key start
LH: loop header
LB: loop body
LE: loop exit
PB: predicated region body
PF: predicated region fallthrough
CT: control target
= control target key end

     0   :  { %s1039_s0 = inlined_call_operand.vmem [shape: f32[2,4,256], index: 0, kind: input, shape index: {}]   ;;  %s1040_s1 = inlined_call_operand.vmem [shape: f32[2,4,256], index: 1, kind: input, shape index: {}]   ;;  %s1041_s2 = inlined_call_operand.vmem [shape: f32[8,4], index: 2, kind: input, shape index: {}]   ;;  %s1042_s3 = inlined_call_operand.vmem [shape: f32[8,4], index: 3, kind: input, shape index: {}]   ;;  %s1043_s4 = inlined_call_operand.vmem [shape: f32[8,1], index: 4, kind: input, shape index: {}]   ;;  %s1044_s5 = inlined_call_operand.vmem [shape: f32[8,1], index: 5, kind: input, shape index: {}]   ;;  %s1045_s6 = inlined_call_operand.<no memory space> [shape: f32[1,1], index: 6, kind: input, shape index: {}]   ;;  %s1046_s7 = inlined_call_operand.hbm [shape: f32[2,4,256], index: 7, kind: output, shape index: {}]  }
   0x1   :  { %v12_v0 = vstv %s1045_s6 }
   0x2   :  { %13 = vst [vmem:[#allocation2] sm:$0x1] %v12_v0 }
   0x3   :  { %14 = vsyncpa [#allocation4], 0 }
   0x4   :  { %16 = vsyncpa [#allocation4 + $0x1], 0  ;;  %s906_s26 = smov 0   ;;  %s908_s27 = smov 0  }
   0x5   :  { %s910_s28 = smov 0   ;;  %s912_s29 = smov 0  }
   0x6   :  { %s914_s30 = smov 0   ;;  %s916_s8 = smov 0  }
   0x7 LB: > { %s683_s6 = sadd.s32 4294967295, %s858_s8   ;;  %s684_s9 = sadd.s32 4294967294, %s858_s8   ;;  %s858_s8 = sphi %s916_s8, %s22_s8   ;;  %s854_s30 = sphi %s914_s30, %s1053_s30   ;;  %s850_s29 = sphi %s912_s29, %s1052_s29   ;;  %s846_s28 = sphi %s910_s28, %s1051_s28   ;;  %s842_s27 = sphi %s908_s27, %s1050_s27   ;;  %s838_s26 = sphi %s906_s26, %s1049_s26  }
   0x8   : > { %s34_s10 = sadd.s32 1, %s854_s30  ;;  %s204_s11 = sadd.s32 1, %s846_s28 }
   0x9   : > { %p36_p0 = scmp.ge.s32.totalorder %s34_s10, 2  ;;  %p214_p1 = scmp.ne.s32.totalorder %s846_s28, %s842_s27 }
   0xa   : > { %p215_p2 = scmp.eq.s32.totalorder %s683_s6, 1  ;;  %p220_p3 = scmp.ne.s32.totalorder %s842_s27, %s838_s26 }
   0xb   : > { %s1055_s10 = smov (%p36_p0, %s34_s10), 0  ;;  %p221_p5 = scmp.eq.s32.totalorder %s684_s9, 1 }
   0xc   : > { %p946_p4 = por %p215_p2, %p214_p1  ;;  %s199_s13 = ssub.s32 %s854_s30, %s1055_s10 }
   0xd   : > { %p687_p6 = scmp.ge.s32.totalorder %s858_s8, 1  ;;  %p202_p7 = scmp.eq.s32.totalorder %s199_s13, 0 }
   0xe   : > { %p953_p8 = por %p221_p5, %p220_p3  ;;  %p280_p9 = scmp.lt.s32.totalorder %s858_s8, 3 }
   0xf   : > { %s959_s15 = scalar_select %p202_p7, %s846_s28, %s204_s11  }
  0x10   : > { %p281_p10 = pnand %p687_p6, %p280_p9 }
  0x11   : > { %p326_p11 = scmp.lt.s32.totalorder (!%p281_p10), %s850_s29, 1  ;;  %v860_v1 = vmov (!%p281_p10), 0.0   ;;  %v348_v2 = vld [vmem:[%s1043_s4] sm:$0xff] (!%p281_p10)  ;;  %v861_v4 = vmov (!%p281_p10), 0   ;;  %vm359_vm0 = vcmask (!%p281_p10), 1043456   ;;  %vm355_vm1 = vcmask (!%p281_p10), 31744  }
  0x12   : > { %284 = sbr.rel (%p281_p10) target bundleno = 314 (0x13a), region = 48  ;;  %428 = vmatprep.mubr.f32.mxu1 (!%p281_p10), %v860_v1  ;;  %508 = vmatprep.mubr.f32.mxu0 (!%p281_p10), %v860_v1  ;;  %v350_v3 = vld [vmem:[#allocation2] sm:$0x1] (!%p281_p10)  ;;  %v548_v22 = vlaneseq (!%p281_p10)  ;;  %s708_s20 = sshll.u32 (!%p281_p10), %s850_s29, 7 }
  0x13   : > { %768 = vset.pattern.permute.xlu0 (!%p281_p10), %v861_v4  ;;  %769 = vset.pattern.permute.xlu1 (!%p281_p10), %v861_v4  ;;  %v349_v5 = vld [vmem:[%s1044_s5] sm:$0xff] (!%p281_p10)  ;;  %s992_s25 = scalar_lea.hbm (!%p281_p10), %s1046_s7, %s708_s20 }
  0x14   : > { %517 = vperm.xlu0 (!%p281_p10), %768, %v348_v2   ;;  %545 = vperm.xlu1 (!%p281_p10), %769, %v350_v3   ;;  %v347_v10 = vld [vmem:[%s1042_s3] sm:$0xff] (!%p281_p10)  ;;  %v549_v28 = vshrl.u32 (!%p281_p10), %v548_v22, 7 }
  0x15   : > { %v346_v11 = vld [vmem:[%s1041_s2] sm:$0xff] (!%p281_p10) }
  0x16   : > { %v550_v33 = vsub.s32 (!%p281_p10), 0, %v549_v28 }
  0x18   : > { %526 = vperm.xlu0 (!%p281_p10), %768, %v349_v5  }
  0x19   : > { %s327_s18 = scalar_select %p326_p11, %s850_s29, 1 }
  0x1a   : > { %s862_s29 = smov [#allocation3]  }
  0x1b   : > { %s706_s19 = sshll.u32 %s327_s18, 3  ;;  %s322_s18 = sand.u32 1, %s842_s27  }
  0x1c   : > { %s343_s24 = scalar_lea.vmem %s1040_s1, %s706_s19  ;;  %s333_s9 = scalar_lea.vmem %s1039_s0, %s706_s19 }
  0x1d   : > { %v975_v6 = vld [vmem:[%s343_s24] sm:$0xff]  ;;  %s688_s19 = sshll.u32 %s322_s18, 3  ;;  %s573_s6 = scalar_lea.sflag [#allocation4], %s322_s18 }
  0x1e   : > { %v351_v7 = vld [vmem:[%s333_s9] sm:$0xff]  ;;  %v354_v8 = vcombine.high %v975_v6, %v975_v6  ;;  %s324_s21 = scalar_lea.vmem [#allocation3], %s688_s19  ;;  %s784_s11 = sshll.u32 %s862_s29, 4  ;;  %s785_s11 = int_to_ptr.vmem [resolvable:$false] %s784_s11 }
  0x1f   : > { %v436_v9 = vcombine.high %v351_v7, %v351_v7  ;;  %s589_s22 = sshll.u32 %s324_s21, 4  ;;  %s786_s13 = scalar_lea.vmem %s785_s11, 256  ;;  %s994_s22 = int_to_ptr.vmem [resolvable:$true] %s589_s22 }
  0x20   : > { %693 = vmatprep.subr.msk.mxu1 %vm359_vm0, %v354_v8  ;;  %s780_s9 = scalar_lea.vmem %s994_s22, 128  ;;  %p787_p1 = scmp.lt.s32.totalorder %s994_s22, %s785_s11 }
  0x21   : > { %696 = vmatprep.subr.msk.mxu0 %vm359_vm0, %v436_v9  ;;  %694 = vmatpush1.msk.msra.mxu1 %vm359_vm0, %v975_v6  ;;  %p781_p12 = scmp.ne.s32.totalorder %s994_s22, %s780_s9  ;;  %p788_p2 = scmp.lt.s32.totalorder %s786_s13, %s780_s9 }
  0x22   : > { %697 = vmatpush1.msk.msra.mxu0 %vm359_vm0, %v351_v7  ;;  %695 = vmatmul.mubr.msk.f32.vlgmr.msra.gmra.mrb[0].mxu1 %vm355_vm1, %v347_v10 }
  0x23   : > { %698 = vmatmul.mubr.msk.f32.vlgmr.msra.gmra.mrb[0].mxu0 %vm355_vm1, %v346_v11  ;;  %p782_p13 = pnand %p781_p12, %p946_p4  ;;  %p789_p3 = por %p788_p2, %p787_p1 }
  0x25   : > { %p783_p0 = pneg %p782_p13 }
  0x27   : > { %p790_p5 = pnand %p789_p3, %p783_p0 }
  0x93   : > { %v518_v12 = vpop.permute.xlu0 %517  ;;  %v546_v35 = vpop.permute.xlu1 %545 }
  0x94   : > { %v551_v39 = vrot.slane %v546_v35, %v550_v33 }
  0x97   : > { %v527_v23 = vpop.permute.xlu0 %526 }
  0xf5   : > { %v430_v13 = vpop.f32.mrb[0].mxu1 }
  0xf6   : > { %v510_v14 = vpop.f32.mrb[0].mxu0  ;;  %v432_v16 = vpop.f32.mrb[1].mxu1 }
  0xf7   : > { %v511_v15 = vadd.f32 %v510_v14, %v430_v13  ;;  %v512_v17 = vpop.f32.mrb[1].mxu0 }
  0xf8   : > { %v513_v18 = vadd.f32 %v512_v17, %v432_v16 }
  0xf9   : > { %v520_v19 = vadd.f32 %v518_v12, %v511_v15 }
  0xfa   : > { %v521_v20 = vadd.f32 %v518_v12, %v513_v18 }
  0xfb   : > { %v522_v21 = vmax.f32 %v520_v19, 0.0 }
  0xfc   : > { %v523_v24 = vmax.f32 %v521_v20, 0.0 }
  0xfd   : > { %v529_v25 = vmul.f32 %v527_v23, %v522_v21 }
  0xfe   : > { %v530_v26 = vmul.f32 %v527_v23, %v523_v24 }
  0xff   : > { %v531_v27 = vrot.slane %v529_v25, 4 }
 0x100   : > { %v537_v29 = vrot.slane %v530_v26, 4 }
 0x101   : > { %v532_v30 = vadd.f32 %v531_v27, %v529_v25 }
 0x102   : > { %v538_v31 = vadd.f32 %v537_v29, %v530_v26 }
 0x103   : > { %v533_v32 = vrot.slane %v532_v30, 2 }
 0x104   : > { %v539_v34 = vrot.slane %v538_v31, 2 }
 0x105   : > { %v534_v36 = vadd.f32 %v533_v32, %v532_v30 }
 0x106   : > { %v540_v37 = vadd.f32 %v539_v34, %v538_v31 }
 0x107   : > { %v535_v38 = vrot.slane %v534_v36, 1 }
 0x108   : > { %v541_v40 = vrot.slane %v540_v37, 1 }
 0x109   : > { %v536_v41 = vadd.f32 %v535_v38, %v534_v36 }
 0x10a   : > { %v542_v42 = vadd.f32 %v541_v40, %v540_v37 }
 0x10b   : > { %v552_v43 = vadd.f32 %v551_v39, %v536_v41 }
 0x10c   : > { %v553_v44 = vadd.f32 %v551_v39, %v542_v42 }
 0x10d   : > { %v699_v45 = vmul.f32 -1.442695, %v552_v43 }
 0x10e   : > { %v700_v46 = vmul.f32 -1.442695, %v553_v44 }
 0x10f   : > { %772 = vpow2.f32 %v699_v45 }
 0x110   : > { %774 = vpow2.f32 %v700_v46 }
 0x119   : > { %v773_v47 = vpop.eup %772 }
 0x11a   : > { %v775_v48 = vpop.eup %774  ;;  %v560_v49 = vadd.f32 1.0, %v773_v47 }
 0x11b   : > { %v561_v50 = vadd.f32 1.0, %v775_v48 }
 0x11c   : > { %776 = vrcp.f32 %v560_v49 }
 0x11d   : > { %778 = vrcp.f32 %v561_v50 }
 0x126   : > { %v777_v51 = vpop.eup %776 }
 0x127   : > { %v779_v52 = vpop.eup %778 }
 0x128   : > { %v568_v53 = vcombine.low %v777_v51, %v779_v52 }
 0x12a   : > { %v570_v54 = vmul.f32 %v568_v53, %v975_v6 }
 0x12c   : > { %571 = vst [vmem:[%s324_s21] sm:$0xff] %v570_v54 }
 0x12d   : > { %793 = shalt.err (!%p790_p5)
}
 0x12e   : > { %s794_s16 = scalar_lea.hbm %s992_s25, 128  ;;  %s798_s19 = scalar_lea.hbm %s1046_s7, 256 }
 0x12f   : > { %p795_p6 = scmp.ne.s32.totalorder %s992_s25, %s794_s16  ;;  %p799_p10 = scmp.lt.u32.totalorder %s992_s25, %s1046_s7 }
 0x130   : > { %p800_p11 = scmp.lt.u32.totalorder %s798_s19, %s794_s16  ;;  %p802_p13 = scmp.lt.u32.totalorder %s794_s16, %s992_s25 }
 0x131   : > { %p796_p7 = pnand %p795_p6, %p946_p4 }
 0x132   : > { %p801_p12 = por %p800_p11, %p799_p10 }
 0x133   : > { %p797_p9 = pneg %p796_p7 }
 0x134   : > { %p803_p0 = por %p802_p13, %p801_p12 }
 0x136   : > { %p804_p1 = pnand %p803_p0, %p797_p9 }
 0x138   : > { %807 = shalt.err (!%p804_p1)
}
 0x139   : > { %711 = dma.vmem_to_hbm [thread:$0]  (%p946_p4), %s994_s22, 128, %s992_s25, %s573_s6  }
 0x13a PF: > { %p717_p2 = scmp.ge.s32.totalorder %s858_s8, 2  ;;  %s601_s23 = sand.u32 1, %s838_s26  }
 0x13b   : > { %s602_s24 = scalar_lea.sflag [#allocation4], %s601_s23 }
 0x13c   : > { %p714_p3 = pnand %p717_p2, %p953_p8 }
 0x13e   : > { %833 = dma.done.wait (!%p714_p3), %s602_s24, 128  }
 0x13f   : > { %835 = vsyncadd (!%p714_p3), %s602_s24, 4294967168  ;;  %s22_s8 = sadd.s32 1, %s858_s8   ;;  %s1049_s26 = smov %s842_s27 }
 0x140   : > { %p19_p5 = scmp.ge.s32.totalorder %s22_s8, 4   ;;  %s1050_s27 = smov %s846_s28 }
 0x141   : > { %s1051_s28 = smov %s959_s15  ;;  %s1052_s29 = smov %s854_s30 }
 0x142   : > { %s1053_s30 = smov %s1055_s10  ;;  %21 = sbr.rel (!%p19_p5) target bundleno = 7 (0x7), region = 86 }
 0x149   :  { %607 = vsyncpa [#allocation4], 1 }
 0x14a   :  { %609 = vsyncpa [#allocation4 + $0x1], 1 }

// kernel: tpu_custom_call.1
= control target key start
LH: loop header
LB: loop body
LE: loop exit
PB: predicated region body
PF: predicated region fallthrough
CT: control target
= control target key end

     0   :  { %s1039_s0 = inlined_call_operand.vmem [shape: f32[2,4,256], index: 0, kind: input, shape index: {}]   ;;  %s1040_s1 = inlined_call_operand.vmem [shape: f32[2,4,256], index: 1, kind: input, shape index: {}]   ;;  %s1041_s2 = inlined_call_operand.vmem [shape: f32[8,4], index: 2, kind: input, shape index: {}]   ;;  %s1042_s3 = inlined_call_operand.vmem [shape: f32[8,4], index: 3, kind: input, shape index: {}]   ;;  %s1043_s4 = inlined_call_operand.vmem [shape: f32[8,1], index: 4, kind: input, shape index: {}]   ;;  %s1044_s5 = inlined_call_operand.vmem [shape: f32[8,1], index: 5, kind: input, shape index: {}]   ;;  %s1045_s6 = inlined_call_operand.<no memory space> [shape: f32[1,1], index: 6, kind: input, shape index: {}]   ;;  %s1046_s7 = inlined_call_operand.hbm [shape: f32[2,4,256], index: 7, kind: output, shape index: {}]  }
   0x1   :  { %v12_v0 = vstv %s1045_s6 }
   0x2   :  { %13 = vst [vmem:[#allocation2] sm:$0x1] %v12_v0 }
   0x3   :  { %14 = vsyncpa [#allocation4], 0 }
   0x4   :  { %16 = vsyncpa [#allocation4 + $0x1], 0  ;;  %s906_s26 = smov 0   ;;  %s908_s27 = smov 0  }
   0x5   :  { %s910_s28 = smov 0   ;;  %s912_s29 = smov 0  }
   0x6   :  { %s914_s30 = smov 0   ;;  %s916_s8 = smov 0  }
   0x7 LB: > { %s683_s6 = sadd.s32 4294967295, %s858_s8   ;;  %s684_s9 = sadd.s32 4294967294, %s858_s8   ;;  %s858_s8 = sphi %s916_s8, %s22_s8   ;;  %s854_s30 = sphi %s914_s30, %s1053_s30   ;;  %s850_s29 = sphi %s912_s29, %s1052_s29   ;;  %s846_s28 = sphi %s910_s28, %s1051_s28   ;;  %s842_s27 = sphi %s908_s27, %s1050_s27   ;;  %s838_s26 = sphi %s906_s26, %s1049_s26  }
   0x8   : > { %s34_s10 = sadd.s32 1, %s854_s30  ;;  %s204_s11 = sadd.s32 1, %s846_s28 }
   0x9   : > { %p36_p0 = scmp.ge.s32.totalorder %s34_s10, 2  ;;  %p214_p1 = scmp.ne.s32.totalorder %s846_s28, %s842_s27 }
   0xa   : > { %p215_p2 = scmp.eq.s32.totalorder %s683_s6, 1  ;;  %p220_p3 = scmp.ne.s32.totalorder %s842_s27, %s838_s26 }
   0xb   : > { %s1055_s10 = smov (%p36_p0, %s34_s10), 0  ;;  %p221_p5 = scmp.eq.s32.totalorder %s684_s9, 1 }
   0xc   : > { %p946_p4 = por %p215_p2, %p214_p1  ;;  %s199_s13 = ssub.s32 %s854_s30, %s1055_s10 }
   0xd   : > { %p687_p6 = scmp.ge.s32.totalorder %s858_s8, 1  ;;  %p202_p7 = scmp.eq.s32.totalorder %s199_s13, 0 }
   0xe   : > { %p953_p8 = por %p221_p5, %p220_p3  ;;  %p280_p9 = scmp.lt.s32.totalorder %s858_s8, 3 }
   0xf   : > { %s959_s15 = scalar_select %p202_p7, %s846_s28, %s204_s11  }
  0x10   : > { %p281_p10 = pnand %p687_p6, %p280_p9 }
  0x11   : > { %p326_p11 = scmp.lt.s32.totalorder (!%p281_p10), %s850_s29, 1  ;;  %v860_v1 = vmov (!%p281_p10), 0.0   ;;  %v348_v2 = vld [vmem:[%s1043_s4] sm:$0xff] (!%p281_p10)  ;;  %v861_v4 = vmov (!%p281_p10), 0   ;;  %vm359_vm0 = vcmask (!%p281_p10), 1043456   ;;  %vm355_vm1 = vcmask (!%p281_p10), 31744  }
  0x12   : > { %284 = sbr.rel (%p281_p10) target bundleno = 314 (0x13a), region = 48  ;;  %428 = vmatprep.mubr.f32.mxu1 (!%p281_p10), %v860_v1  ;;  %508 = vmatprep.mubr.f32.mxu0 (!%p281_p10), %v860_v1  ;;  %v350_v3 = vld [vmem:[#allocation2] sm:$0x1] (!%p281_p10)  ;;  %v548_v22 = vlaneseq (!%p281_p10)  ;;  %s708_s20 = sshll.u32 (!%p281_p10), %s850_s29, 7 }
  0x13   : > { %768 = vset.pattern.permute.xlu0 (!%p281_p10), %v861_v4  ;;  %769 = vset.pattern.permute.xlu1 (!%p281_p10), %v861_v4  ;;  %v349_v5 = vld [vmem:[%s1044_s5] sm:$0xff] (!%p281_p10)  ;;  %s992_s25 = scalar_lea.hbm (!%p281_p10), %s1046_s7, %s708_s20 }
  0x14   : > { %517 = vperm.xlu0 (!%p281_p10), %768, %v348_v2   ;;  %545 = vperm.xlu1 (!%p281_p10), %769, %v350_v3   ;;  %v347_v10 = vld [vmem:[%s1042_s3] sm:$0xff] (!%p281_p10)  ;;  %v549_v28 = vshrl.u32 (!%p281_p10), %v548_v22, 7 }
  0x15   : > { %v346_v11 = vld [vmem:[%s1041_s2] sm:$0xff] (!%p281_p10) }
  0x16   : > { %v550_v33 = vsub.s32 (!%p281_p10), 0, %v549_v28 }
  0x18   : > { %526 = vperm.xlu0 (!%p281_p10), %768, %v349_v5  }
  0x19   : > { %s327_s18 = scalar_select %p326_p11, %s850_s29, 1 }
  0x1a   : > { %s862_s29 = smov [#allocation3]  }
  0x1b   : > { %s706_s19 = sshll.u32 %s327_s18, 3  ;;  %s322_s18 = sand.u32 1, %s842_s27  }
  0x1c   : > { %s343_s24 = scalar_lea.vmem %s1040_s1, %s706_s19  ;;  %s333_s9 = scalar_lea.vmem %s1039_s0, %s706_s19 }
  0x1d   : > { %v975_v6 = vld [vmem:[%s343_s24] sm:$0xff]  ;;  %s688_s19 = sshll.u32 %s322_s18, 3  ;;  %s573_s6 = scalar_lea.sflag [#allocation4], %s322_s18 }
  0x1e   : > { %v351_v7 = vld [vmem:[%s333_s9] sm:$0xff]  ;;  %v354_v8 = vcombine.high %v975_v6, %v975_v6  ;;  %s324_s21 = scalar_lea.vmem [#allocation3], %s688_s19  ;;  %s784_s11 = sshll.u32 %s862_s29, 4  ;;  %s785_s11 = int_to_ptr.vmem [resolvable:$false] %s784_s11 }
  0x1f   : > { %v436_v9 = vcombine.high %v351_v7, %v351_v7  ;;  %s589_s22 = sshll.u32 %s324_s21, 4  ;;  %s786_s13 = scalar_lea.vmem %s785_s11, 256  ;;  %s994_s22 = int_to_ptr.vmem [resolvable:$true] %s589_s22 }
  0x20   : > { %693 = vmatprep.subr.msk.mxu1 %vm359_vm0, %v354_v8  ;;  %s780_s9 = scalar_lea.vmem %s994_s22, 128  ;;  %p787_p1 = scmp.lt.s32.totalorder %s994_s22, %s785_s11 }
  0x21   : > { %696 = vmatprep.subr.msk.mxu0 %vm359_vm0, %v436_v9  ;;  %694 = vmatpush1.msk.msra.mxu1 %vm359_vm0, %v975_v6  ;;  %p781_p12 = scmp.ne.s32.totalorder %s994_s22, %s780_s9  ;;  %p788_p2 = scmp.lt.s32.totalorder %s786_s13, %s780_s9 }
  0x22   : > { %697 = vmatpush1.msk.msra.mxu0 %vm359_vm0, %v351_v7  ;;  %695 = vmatmul.mubr.msk.f32.vlgmr.msra.gmra.mrb[0].mxu1 %vm355_vm1, %v347_v10 }
  0x23   : > { %698 = vmatmul.mubr.msk.f32.vlgmr.msra.gmra.mrb[0].mxu0 %vm355_vm1, %v346_v11  ;;  %p782_p13 = pnand %p781_p12, %p946_p4  ;;  %p789_p3 = por %p788_p2, %p787_p1 }
  0x25   : > { %p783_p0 = pneg %p782_p13 }
  0x27   : > { %p790_p5 = pnand %p789_p3, %p783_p0 }
  0x93   : > { %v518_v12 = vpop.permute.xlu0 %517  ;;  %v546_v35 = vpop.permute.xlu1 %545 }
  0x94   : > { %v551_v39 = vrot.slane %v546_v35, %v550_v33 }
  0x97   : > { %v527_v23 = vpop.permute.xlu0 %526 }
  0xf5   : > { %v430_v13 = vpop.f32.mrb[0].mxu1 }
  0xf6   : > { %v510_v14 = vpop.f32.mrb[0].mxu0  ;;  %v432_v16 = vpop.f32.mrb[1].mxu1 }
  0xf7   : > { %v511_v15 = vadd.f32 %v510_v14, %v430_v13  ;;  %v512_v17 = vpop.f32.mrb[1].mxu0 }
  0xf8   : > { %v513_v18 = vadd.f32 %v512_v17, %v432_v16 }
  0xf9   : > { %v520_v19 = vadd.f32 %v518_v12, %v511_v15 }
  0xfa   : > { %v521_v20 = vadd.f32 %v518_v12, %v513_v18 }
  0xfb   : > { %v522_v21 = vmax.f32 %v520_v19, 0.0 }
  0xfc   : > { %v523_v24 = vmax.f32 %v521_v20, 0.0 }
  0xfd   : > { %v529_v25 = vmul.f32 %v527_v23, %v522_v21 }
  0xfe   : > { %v530_v26 = vmul.f32 %v527_v23, %v523_v24 }
  0xff   : > { %v531_v27 = vrot.slane %v529_v25, 4 }
 0x100   : > { %v537_v29 = vrot.slane %v530_v26, 4 }
 0x101   : > { %v532_v30 = vadd.f32 %v531_v27, %v529_v25 }
 0x102   : > { %v538_v31 = vadd.f32 %v537_v29, %v530_v26 }
 0x103   : > { %v533_v32 = vrot.slane %v532_v30, 2 }
 0x104   : > { %v539_v34 = vrot.slane %v538_v31, 2 }
 0x105   : > { %v534_v36 = vadd.f32 %v533_v32, %v532_v30 }
 0x106   : > { %v540_v37 = vadd.f32 %v539_v34, %v538_v31 }
 0x107   : > { %v535_v38 = vrot.slane %v534_v36, 1 }
 0x108   : > { %v541_v40 = vrot.slane %v540_v37, 1 }
 0x109   : > { %v536_v41 = vadd.f32 %v535_v38, %v534_v36 }
 0x10a   : > { %v542_v42 = vadd.f32 %v541_v40, %v540_v37 }
 0x10b   : > { %v552_v43 = vadd.f32 %v551_v39, %v536_v41 }
 0x10c   : > { %v553_v44 = vadd.f32 %v551_v39, %v542_v42 }
 0x10d   : > { %v699_v45 = vmul.f32 -1.442695, %v552_v43 }
 0x10e   : > { %v700_v46 = vmul.f32 -1.442695, %v553_v44 }
 0x10f   : > { %772 = vpow2.f32 %v699_v45 }
 0x110   : > { %774 = vpow2.f32 %v700_v46 }
 0x119   : > { %v773_v47 = vpop.eup %772 }
 0x11a   : > { %v775_v48 = vpop.eup %774  ;;  %v560_v49 = vadd.f32 1.0, %v773_v47 }
 0x11b   : > { %v561_v50 = vadd.f32 1.0, %v775_v48 }
 0x11c   : > { %776 = vrcp.f32 %v560_v49 }
 0x11d   : > { %778 = vrcp.f32 %v561_v50 }
 0x126   : > { %v777_v51 = vpop.eup %776 }
 0x127   : > { %v779_v52 = vpop.eup %778 }
 0x128   : > { %v568_v53 = vcombine.low %v777_v51, %v779_v52 }
 0x12a   : > { %v570_v54 = vmul.f32 %v568_v53, %v975_v6 }
 0x12c   : > { %571 = vst [vmem:[%s324_s21] sm:$0xff] %v570_v54 }
 0x12d   : > { %793 = shalt.err (!%p790_p5)
}
 0x12e   : > { %s794_s16 = scalar_lea.hbm %s992_s25, 128  ;;  %s798_s19 = scalar_lea.hbm %s1046_s7, 256 }
 0x12f   : > { %p795_p6 = scmp.ne.s32.totalorder %s992_s25, %s794_s16  ;;  %p799_p10 = scmp.lt.u32.totalorder %s992_s25, %s1046_s7 }
 0x130   : > { %p800_p11 = scmp.lt.u32.totalorder %s798_s19, %s794_s16  ;;  %p802_p13 = scmp.lt.u32.totalorder %s794_s16, %s992_s25 }
 0x131   : > { %p796_p7 = pnand %p795_p6, %p946_p4 }
 0x132   : > { %p801_p12 = por %p800_p11, %p799_p10 }
 0x133   : > { %p797_p9 = pneg %p796_p7 }
 0x134   : > { %p803_p0 = por %p802_p13, %p801_p12 }
 0x136   : > { %p804_p1 = pnand %p803_p0, %p797_p9 }
 0x138   : > { %807 = shalt.err (!%p804_p1)
}
 0x139   : > { %711 = dma.vmem_to_hbm [thread:$0]  (%p946_p4), %s994_s22, 128, %s992_s25, %s573_s6  }
 0x13a PF: > { %p717_p2 = scmp.ge.s32.totalorder %s858_s8, 2  ;;  %s601_s23 = sand.u32 1, %s838_s26  }
 0x13b   : > { %s602_s24 = scalar_lea.sflag [#allocation4], %s601_s23 }
 0x13c   : > { %p714_p3 = pnand %p717_p2, %p953_p8 }
 0x13e   : > { %833 = dma.done.wait (!%p714_p3), %s602_s24, 128  }
 0x13f   : > { %835 = vsyncadd (!%p714_p3), %s602_s24, 4294967168  ;;  %s22_s8 = sadd.s32 1, %s858_s8   ;;  %s1049_s26 = smov %s842_s27 }
 0x140   : > { %p19_p5 = scmp.ge.s32.totalorder %s22_s8, 4   ;;  %s1050_s27 = smov %s846_s28 }
 0x141   : > { %s1051_s28 = smov %s959_s15  ;;  %s1052_s29 = smov %s854_s30 }
 0x142   : > { %s1053_s30 = smov %s1055_s10  ;;  %21 = sbr.rel (!%p19_p5) target bundleno = 7 (0x7), region = 86 }
 0x149   :  { %607 = vsyncpa [#allocation4], 1 }
 0x14a   :  { %609 = vsyncpa [#allocation4 + $0x1], 1 }

</bundles_post_ra>
